<compile_context>
chip_gen: v7x
topology: tpu7x:2x2x1
jax: 0.10.0
libtpu: 0.0.40
codegen_flags: <defaults>
</compile_context>

<pallas_src>
import functools
import math

import jax
import jax.numpy as jnp
from jax.experimental import pallas as pl
from jax.experimental.pallas import tpu as pltpu


# Worst-case number of live (ts, 128) f32 compute temporaries inside the kernel
# (m, denom/inv, current logits/exp, softmax, mask/terms, partial reduce, ...).
_TEMP_SLABS = 8


def _sublane_quantum(dtype):
    """Sublane multiple required for an unpadded (q, 128) tile of this dtype."""
    itemsize = jnp.dtype(dtype).itemsize
    return {1: 32, 2: 16, 4: 8}.get(itemsize, 8)


def _vmem_limit_bytes():
    """Per-generation VMEM limit: ~half of physical, capped at 64 MiB."""
    cap = None
    try:
        info = pltpu.get_tpu_info()
        cap = getattr(info, "vmem_capacity_bytes", None)
    except Exception:
        cap = None
    if not cap:
        cap = 64 * 1024 * 1024  # conservative: v7x physical per-TC VMEM
    return int(min(cap // 2, 64 * 1024 * 1024))


def _pick_tiling(SB, quantum, row_bytes, budget_bytes):
    """Choose (P, ts): P parallel spatial chunks (2 keeps both v7x TensorCores
    busy at small batch; a no-op on single-TC v5e/v6e) and the largest spatial
    tile ts (in 128-lane rows) that divides SB // P, is a multiple of the
    dtype sublane quantum, and fits double-buffered DMA + live compute
    temporaries inside the VMEM budget."""

    def fits(ts):
        dma = 2 * ts * row_bytes                    # 2 pipeline buffers per input
        temps = _TEMP_SLABS * ts * 128 * 4          # live f32 compute slabs
        return dma + temps <= budget_bytes

    for P in (2, 1):
        if SB % P:
            continue
        chunk = SB // P
        if quantum > chunk or chunk % quantum:
            continue
        cands = [d for d in range(quantum, chunk + 1, quantum) if chunk % d == 0]
        good = [d for d in cands if fits(d)]
        if good:
            return P, max(good)
        if cands:
            return P, min(cands)  # nothing meets the soft budget; smallest legal tile
    # Awkward SB (smaller than / not a multiple of the quantum): one full-extent
    # block per sample.  TODO(synk): ragged large SB is not tiled further.
    return 1, SB


def _dice_partial_kernel(p_ref, t_ref, num_ref, den_ref, num_sc, den_sc, *,
                         target_is_labels):
    """One (sample, chunk, spatial-tile) grid step.

    p_ref:   (1, C, ts, 128) logits tile (HBM dtype; upcast to f32 in-kernel).
    t_ref:   (1, ts, 128) integer labels  OR  (1, C, ts, 128) one-hot target.
    num_ref / den_ref: (1, 1, C, 1) raw per-(sample, chunk, class) sums,
        written once on the last spatial step of the chunk.
    num_sc / den_sc: (C, rows, 128) f32 running partial sums (VMEM scratch).
    """
    k = pl.program_id(2)
    C = p_ref.shape[1]
    ts = p_ref.shape[2]
    rows = num_sc.shape[1]

    @pl.when(k == 0)
    def _():
        num_sc[...] = jnp.zeros_like(num_sc)
        den_sc[...] = jnp.zeros_like(den_sc)

    def logits(c):
        return p_ref[0, c].astype(jnp.float32)   # fresh VMEM vld each pass (cheap)

    # ---- pass 1: running class-wise max (<= 2 live (ts,128) slabs) ----------
    m = logits(0)
    for c in range(1, C):
        m = jnp.maximum(m, logits(c))

    # ---- pass 2: softmax denominator, re-reading logits (<= 3 live slabs) ---
    denom = jnp.exp(logits(0) - m)
    for c in range(1, C):
        denom = denom + jnp.exp(logits(c) - m)
    # Exact divide keeps parity with the f32 reference at 1e-5.
    # TODO(synk): pl.reciprocal(denom, approx=True) would free VALU cycles on
    # v7x (EUP slot) at ~2^-12 relative error; re-validate tolerance if enabled.
    inv = 1.0 / denom

    if target_is_labels:
        labels = t_ref[0].astype(jnp.int32)      # unpack int8 labels once per tile

    def partial_rows(x):
        # (ts, 128) -> (rows, 128): pure VALU vreg-add tree, no cross-sublane work.
        if rows == 8:
            return jnp.sum(x.reshape(ts // 8, 8, 128), axis=0)
        return jnp.sum(x, axis=0, keepdims=True)

    # ---- pass 3: per-class partial num/den sums (<= ~6 live slabs) ----------
    for c in range(C):
        sm = jnp.exp(logits(c) - m) * inv                 # softmax prob of class c
        if target_is_labels:
            mask = labels == c
            num_term = jnp.where(mask, sm, 0.0)           # sm * t_c, fused select
            den_term = sm * sm + jnp.where(mask, 1.0, 0.0)  # t^2 == t (hard one-hot)
        else:
            t = t_ref[0, c].astype(jnp.float32)
            num_term = sm * t
            den_term = sm * sm + t * t                    # exact p=2 denominator
        num_sc[c] = num_sc[c] + partial_rows(num_term)
        den_sc[c] = den_sc[c] + partial_rows(den_term)

    @pl.when(k == pl.num_programs(2) - 1)
    def _():
        # Deferred cross-sublane + cross-lane (XLU) reduces: once per (n, chunk).
        num_ref[0, 0] = jnp.sum(jnp.sum(num_sc[...], axis=1), axis=-1, keepdims=True)
        den_ref[0, 0] = jnp.sum(jnp.sum(den_sc[...], axis=1), axis=-1, keepdims=True)


def _dice_partial_sums(predict, target_or_labels, *, target_is_labels):
    """Run the kernel; returns raw (num, den) sums of shape (N, P, C, 1) f32."""
    N, C = predict.shape[:2]
    S = math.prod(predict.shape[2:])
    # TODO(synk): spatial sizes not divisible by 128 would need padding/masking.
    assert S % 128 == 0, "spatial size must be a multiple of 128"
    SB = S // 128

    p4 = predict.reshape(N, C, SB, 128)                  # keep HBM dtype
    p_item = jnp.dtype(predict.dtype).itemsize

    if target_is_labels:
        assert (target_or_labels.shape[0] == N
                and math.prod(target_or_labels.shape[1:]) == S), \
            "labels spatial size must match predict"
        # int8 labels cut the label HBM stream 4x; only when the (32,128) int8
        # tiling divides SB cleanly (otherwise keep int32 to avoid padding).
        lbl_dtype = jnp.int8 if (C <= 127 and SB % 32 == 0) else jnp.int32
        t_in = target_or_labels.reshape(N, SB, 128).astype(lbl_dtype)
        t_row_bytes = 128 * jnp.dtype(lbl_dtype).itemsize
        quantum = math.lcm(_sublane_quantum(predict.dtype),
                           _sublane_quantum(lbl_dtype))
    else:
        assert target_or_labels.shape == predict.shape, \
            "predict & target shape do not match"
        t_in = target_or_labels.reshape(N, C, SB, 128)
        t_row_bytes = C * 128 * jnp.dtype(t_in.dtype).itemsize
        quantum = math.lcm(_sublane_quantum(predict.dtype),
                           _sublane_quantum(t_in.dtype))

    row_bytes = C * 128 * p_item + t_row_bytes
    vmem_limit = _vmem_limit_bytes()
    P, ts = _pick_tiling(SB, quantum, row_bytes,
                         budget_bytes=int(0.7 * vmem_limit))
    steps = SB // (P * ts)
    rows = 8 if ts % 8 == 0 else 1

    if target_is_labels:
        t_spec = pl.BlockSpec((1, ts, 128), lambda n, p, k: (n, p * steps + k, 0))
    else:
        t_spec = pl.BlockSpec((1, C, ts, 128),
                              lambda n, p, k: (n, 0, p * steps + k, 0))

    num_p, den_p = pl.pallas_call(
        functools.partial(_dice_partial_kernel, target_is_labels=target_is_labels),
        out_shape=(jax.ShapeDtypeStruct((N, P, C, 1), jnp.float32),
                   jax.ShapeDtypeStruct((N, P, C, 1), jnp.float32)),
        grid_spec=pltpu.PrefetchScalarGridSpec(
            num_scalar_prefetch=0,
            grid=(N, P, steps),
            in_specs=[
                pl.BlockSpec((1, C, ts, 128),
                             lambda n, p, k: (n, 0, p * steps + k, 0)),
                t_spec,
            ],
            out_specs=[
                pl.BlockSpec((1, 1, C, 1), lambda n, p, k: (n, p, 0, 0)),
                pl.BlockSpec((1, 1, C, 1), lambda n, p, k: (n, p, 0, 0)),
            ],
            scratch_shapes=[
                pltpu.VMEM((C, rows, 128), jnp.float32),
                pltpu.VMEM((C, rows, 128), jnp.float32),
            ],
        ),
        compiler_params=pltpu.CompilerParams(
            # N and chunk axes parallel (keeps both v7x TCs busy even at N=1);
            # the per-chunk spatial axis is the reduction, kept last.
            dimension_semantics=("parallel", "parallel", "arbitrary"),
            vmem_limit_bytes=vmem_limit,
        ),
    )(p4, t_in)
    return num_p, den_p


def _finalize(num_p, den_p, smooth, num_classes):
    """Combine per-chunk partial sums and apply the DiceLoss reductions."""
    num = jnp.sum(num_p, axis=1)[..., 0]                       # (N, C)
    den = jnp.sum(den_p, axis=1)[..., 0]
    loss_nc = 1.0 - (num + smooth) / (den + smooth)            # per (sample, class)
    per_class = jnp.mean(loss_nc, axis=0)                      # reduction='mean' over batch
    return jnp.sum(per_class) / num_classes                    # sum classes / num_classes


def dice_loss_from_labels(predict, labels, *, smooth=1.0):
    """DiceLoss forward given logits (N, C, *spatial) and integer class labels
    (N, *spatial).  Cheapest path: streams logits + a tiny int8/int32 label map
    (the one-hot is rebuilt in VMEM; t*t == t for hard one-hot)."""
    num_p, den_p = _dice_partial_sums(predict, labels, target_is_labels=True)
    return _finalize(num_p, den_p, float(smooth), predict.shape[1])


def dice_loss(predict, target, *, smooth=1.0):
    """PyTorch-parity entry point: `target` is the (one-hot) tensor with the
    same shape as `predict`.  The target tile is streamed directly into the
    kernel (no hidden dense argmax pre-pass) and t**2 is used exactly, so soft
    / smoothed targets also match the PyTorch module bit-for-bit semantics."""
    assert predict.shape == target.shape, "predict & target shape do not match"
    num_p, den_p = _dice_partial_sums(predict, target, target_is_labels=False)
    return _finalize(num_p, den_p, float(smooth), predict.shape[1])


if __name__ == "__main__":
    key = jax.random.PRNGKey(0)
    k1, k2, k3, k4 = jax.random.split(key, 4)

    def ref_loss(predict, target, smooth=1.0):
        # pure-JAX reference mirroring the PyTorch DiceLoss forward exactly
        N, C = predict.shape[:2]
        pr = jax.nn.softmax(predict, axis=1).reshape(N, C, -1)
        tg = target.reshape(N, C, -1).astype(jnp.float32)
        num = jnp.sum(pr * tg, axis=-1) + smooth
        den = jnp.sum(pr * pr + tg * tg, axis=-1) + smooth
        return jnp.sum(jnp.mean(1.0 - num / den, axis=0)) / C

    # --- case 1: 2D, f32, small spatial (full-extent fallback tiling path) ---
    N, C, H, W = 2, 4, 16, 16
    predict = jax.random.normal(k1, (N, C, H, W), dtype=jnp.float32)
    labels = jax.random.randint(k2, (N, H, W), 0, C)
    target = jax.nn.one_hot(labels, C, dtype=jnp.float32).transpose(0, 3, 1, 2)

    out_onehot = jax.block_until_ready(dice_loss(predict, target))
    out_labels = jax.block_until_ready(dice_loss_from_labels(predict, labels))
    ref = ref_loss(predict, target)
    assert jnp.allclose(out_onehot, ref, atol=1e-5, rtol=1e-5), (out_onehot, ref)
    assert jnp.allclose(out_labels, ref, atol=1e-5, rtol=1e-5), (out_labels, ref)

    # --- case 2: 3D volume, f32 — exercises P=2 chunks, int8 labels, tiling ---
    N, C, D, H, W = 1, 4, 16, 32, 32
    predict = jax.random.normal(k3, (N, C, D, H, W), dtype=jnp.float32)
    labels = jax.random.randint(k4, (N, D, H, W), 0, C)
    target = jax.nn.one_hot(labels, C, dtype=jnp.float32).transpose(0, 4, 1, 2, 3)

    out_onehot = jax.block_until_ready(dice_loss(predict, target))
    out_labels = jax.block_until_ready(dice_loss_from_labels(predict, labels))
    ref = ref_loss(predict, target)
    assert jnp.allclose(out_onehot, ref, atol=1e-5, rtol=1e-5), (out_onehot, ref)
    assert jnp.allclose(out_labels, ref, atol=1e-5, rtol=1e-5), (out_labels, ref)

    print("KERNEL_OK")
</pallas_src>

<mosaic_0001>
module attributes {stable_mosaic.version = 11 : i64} {
  func.func @_dice_partial_kernel(%arg0: i32, %arg1: i32, %arg2: i32, %arg3: memref<1x4x2x128xf32, #tpu.memory_space<vmem>>, %arg4: memref<1x4x2x128xf32, #tpu.memory_space<vmem>>, %arg5: memref<1x1x4x1xf32, #tpu.memory_space<vmem>>, %arg6: memref<1x1x4x1xf32, #tpu.memory_space<vmem>>, %arg7: memref<4x1x128xf32, #tpu.memory_space<vmem>>, %arg8: memref<4x1x128xf32, #tpu.memory_space<vmem>>) attributes {dimension_semantics = [#tpu.dimension_semantics<parallel>, #tpu.dimension_semantics<parallel>, #tpu.dimension_semantics<arbitrary>], iteration_bounds = array<i64: 2, 1, 1>, scalar_prefetch = 0 : i64, scratch_operands = 2 : i64, tpu.core_type = #tpu.core_type<tc>, window_params = [{transform_indices = @transform_0, window_bounds = array<i64: 1, 4, 2, 128>}, {transform_indices = @transform_1, window_bounds = array<i64: 1, 4, 2, 128>}, {transform_indices = @transform_2, window_bounds = array<i64: 1, 1, 4, 1>}, {transform_indices = @transform_3, window_bounds = array<i64: 1, 1, 4, 1>}]} {
    %c0_i32 = arith.constant 0 : i32
    %0 = arith.cmpi eq, %arg2, %c0_i32 : i32
    %1 = arith.extui %0 : i1 to i32
    %c0_i32_0 = arith.constant 0 : i32
    %2 = arith.cmpi ne, %1, %c0_i32_0 : i32
    scf.if %2 {
      %cst_119 = arith.constant 0.000000e+00 : f32
      %146 = vector.broadcast %cst_119 : f32 to vector<4x1x128xf32>
      %c0_120 = arith.constant 0 : index
      %c0_121 = arith.constant 0 : index
      %c0_122 = arith.constant 0 : index
      %147 = vector.load %arg7[%c0_120, %c0_121, %c0_122] : memref<4x1x128xf32, #tpu.memory_space<vmem>>, vector<4x1x128xf32>
      tpu.vector_store %arg7[%c0_120, %c0_121, %c0_122], %146 {strides = array<i32>} : memref<4x1x128xf32, #tpu.memory_space<vmem>>, vector<4x1x128xf32>,
      %cst_123 = arith.constant 0.000000e+00 : f32
      %148 = vector.broadcast %cst_123 : f32 to vector<4x1x128xf32>
      %c0_124 = arith.constant 0 : index
      %c0_125 = arith.constant 0 : index
      %c0_126 = arith.constant 0 : index
      %149 = vector.load %arg8[%c0_124, %c0_125, %c0_126] : memref<4x1x128xf32, #tpu.memory_space<vmem>>, vector<4x1x128xf32>
      tpu.vector_store %arg8[%c0_124, %c0_125, %c0_126], %148 {strides = array<i32>} : memref<4x1x128xf32, #tpu.memory_space<vmem>>, vector<4x1x128xf32>,
    } else {
    }
    %c0 = arith.constant 0 : index
    %c0_1 = arith.constant 0 : index
    %c0_2 = arith.constant 0 : index
    %c0_3 = arith.constant 0 : index
    %3 = vector.load %arg3[%c0, %c0_1, %c0_2, %c0_3] : memref<1x4x2x128xf32, #tpu.memory_space<vmem>>, vector<1x1x2x128xf32>
    %4 = vector.shape_cast %3 : vector<1x1x2x128xf32> to vector<2x128xf32>
    %c0_4 = arith.constant 0 : index
    %c1 = arith.constant 1 : index
    %c0_5 = arith.constant 0 : index
    %c0_6 = arith.constant 0 : index
    %5 = vector.load %arg3[%c0_4, %c1, %c0_5, %c0_6] : memref<1x4x2x128xf32, #tpu.memory_space<vmem>>, vector<1x1x2x128xf32>
    %6 = vector.shape_cast %5 : vector<1x1x2x128xf32> to vector<2x128xf32>
    %7 = arith.maximumf %4, %6 : vector<2x128xf32>
    %c0_7 = arith.constant 0 : index
    %c2 = arith.constant 2 : index
    %c0_8 = arith.constant 0 : index
    %c0_9 = arith.constant 0 : index
    %8 = vector.load %arg3[%c0_7, %c2, %c0_8, %c0_9] : memref<1x4x2x128xf32, #tpu.memory_space<vmem>>, vector<1x1x2x128xf32>
    %9 = vector.shape_cast %8 : vector<1x1x2x128xf32> to vector<2x128xf32>
    %10 = arith.maximumf %7, %9 : vector<2x128xf32>
    %c0_10 = arith.constant 0 : index
    %c3 = arith.constant 3 : index
    %c0_11 = arith.constant 0 : index
    %c0_12 = arith.constant 0 : index
    %11 = vector.load %arg3[%c0_10, %c3, %c0_11, %c0_12] : memref<1x4x2x128xf32, #tpu.memory_space<vmem>>, vector<1x1x2x128xf32>
    %12 = vector.shape_cast %11 : vector<1x1x2x128xf32> to vector<2x128xf32>
    %13 = arith.maximumf %10, %12 : vector<2x128xf32>
    %c0_13 = arith.constant 0 : index
    %c0_14 = arith.constant 0 : index
    %c0_15 = arith.constant 0 : index
    %c0_16 = arith.constant 0 : index
    %14 = vector.load %arg3[%c0_13, %c0_14, %c0_15, %c0_16] : memref<1x4x2x128xf32, #tpu.memory_space<vmem>>, vector<1x1x2x128xf32>
    %15 = vector.shape_cast %14 : vector<1x1x2x128xf32> to vector<2x128xf32>
    %16 = arith.subf %15, %13 : vector<2x128xf32>
    %17 = math.exp %16 : vector<2x128xf32>
    %c0_17 = arith.constant 0 : index
    %c1_18 = arith.constant 1 : index
    %c0_19 = arith.constant 0 : index
    %c0_20 = arith.constant 0 : index
    %18 = vector.load %arg3[%c0_17, %c1_18, %c0_19, %c0_20] : memref<1x4x2x128xf32, #tpu.memory_space<vmem>>, vector<1x1x2x128xf32>
    %19 = vector.shape_cast %18 : vector<1x1x2x128xf32> to vector<2x128xf32>
    %20 = arith.subf %19, %13 : vector<2x128xf32>
    %21 = math.exp %20 : vector<2x128xf32>
    %22 = arith.addf %17, %21 : vector<2x128xf32>
    %c0_21 = arith.constant 0 : index
    %c2_22 = arith.constant 2 : index
    %c0_23 = arith.constant 0 : index
    %c0_24 = arith.constant 0 : index
    %23 = vector.load %arg3[%c0_21, %c2_22, %c0_23, %c0_24] : memref<1x4x2x128xf32, #tpu.memory_space<vmem>>, vector<1x1x2x128xf32>
    %24 = vector.shape_cast %23 : vector<1x1x2x128xf32> to vector<2x128xf32>
    %25 = arith.subf %24, %13 : vector<2x128xf32>
    %26 = math.exp %25 : vector<2x128xf32>
    %27 = arith.addf %22, %26 : vector<2x128xf32>
    %c0_25 = arith.constant 0 : index
    %c3_26 = arith.constant 3 : index
    %c0_27 = arith.constant 0 : index
    %c0_28 = arith.constant 0 : index
    %28 = vector.load %arg3[%c0_25, %c3_26, %c0_27, %c0_28] : memref<1x4x2x128xf32, #tpu.memory_space<vmem>>, vector<1x1x2x128xf32>
    %29 = vector.shape_cast %28 : vector<1x1x2x128xf32> to vector<2x128xf32>
    %30 = arith.subf %29, %13 : vector<2x128xf32>
    %31 = math.exp %30 : vector<2x128xf32>
    %32 = arith.addf %27, %31 : vector<2x128xf32>
    %cst = arith.constant 1.000000e+00 : f32
    %33 = vector.broadcast %cst : f32 to vector<2x128xf32>
    %34 = arith.divf %33, %32 : vector<2x128xf32>
    %c0_29 = arith.constant 0 : index
    %c0_30 = arith.constant 0 : index
    %c0_31 = arith.constant 0 : index
    %c0_32 = arith.constant 0 : index
    %35 = vector.load %arg3[%c0_29, %c0_30, %c0_31, %c0_32] : memref<1x4x2x128xf32, #tpu.memory_space<vmem>>, vector<1x1x2x128xf32>
    %36 = vector.shape_cast %35 : vector<1x1x2x128xf32> to vector<2x128xf32>
    %37 = arith.subf %36, %13 : vector<2x128xf32>
    %38 = math.exp %37 : vector<2x128xf32>
    %39 = arith.mulf %38, %34 : vector<2x128xf32>
    %c0_33 = arith.constant 0 : index
    %c0_34 = arith.constant 0 : index
    %c0_35 = arith.constant 0 : index
    %c0_36 = arith.constant 0 : index
    %40 = vector.load %arg4[%c0_33, %c0_34, %c0_35, %c0_36] : memref<1x4x2x128xf32, #tpu.memory_space<vmem>>, vector<1x1x2x128xf32>
    %41 = vector.shape_cast %40 : vector<1x1x2x128xf32> to vector<2x128xf32>
    %42 = arith.mulf %39, %41 : vector<2x128xf32>
    %43 = arith.mulf %39, %39 : vector<2x128xf32>
    %44 = arith.mulf %41, %41 : vector<2x128xf32>
    %45 = arith.addf %43, %44 : vector<2x128xf32>
    %c0_37 = arith.constant 0 : index
    %c0_38 = arith.constant 0 : index
    %c0_39 = arith.constant 0 : index
    %46 = vector.load %arg7[%c0_37, %c0_38, %c0_39] : memref<4x1x128xf32, #tpu.memory_space<vmem>>, vector<1x1x128xf32>
    %47 = vector.shape_cast %46 : vector<1x1x128xf32> to vector<1x128xf32>
    %cst_40 = arith.constant dense<0.000000e+00> : vector<128xf32>
    %48 = vector.multi_reduction <add>, %42, %cst_40 [0] : vector<2x128xf32> to vector<128xf32>
    %49 = vector.shape_cast %48 : vector<128xf32> to vector<1x128xf32>
    %50 = arith.addf %47, %49 : vector<1x128xf32>
    %c0_41 = arith.constant 0 : index
    %c0_42 = arith.constant 0 : index
    %c0_43 = arith.constant 0 : index
    %51 = vector.load %arg7[%c0_41, %c0_42, %c0_43] : memref<4x1x128xf32, #tpu.memory_space<vmem>>, vector<1x1x128xf32>
    %52 = vector.shape_cast %51 : vector<1x1x128xf32> to vector<1x128xf32>
    %53 = vector.shape_cast %50 : vector<1x128xf32> to vector<1x1x128xf32>
    tpu.vector_store %arg7[%c0_41, %c0_42, %c0_43], %53 {strides = array<i32>} : memref<4x1x128xf32, #tpu.memory_space<vmem>>, vector<1x1x128xf32>,
    %c0_44 = arith.constant 0 : index
    %c0_45 = arith.constant 0 : index
    %c0_46 = arith.constant 0 : index
    %54 = vector.load %arg8[%c0_44, %c0_45, %c0_46] : memref<4x1x128xf32, #tpu.memory_space<vmem>>, vector<1x1x128xf32>
    %55 = vector.shape_cast %54 : vector<1x1x128xf32> to vector<1x128xf32>
    %cst_47 = arith.constant dense<0.000000e+00> : vector<128xf32>
    %56 = vector.multi_reduction <add>, %45, %cst_47 [0] : vector<2x128xf32> to vector<128xf32>
    %57 = vector.shape_cast %56 : vector<128xf32> to vector<1x128xf32>
    %58 = arith.addf %55, %57 : vector<1x128xf32>
    %c0_48 = arith.constant 0 : index
    %c0_49 = arith.constant 0 : index
    %c0_50 = arith.constant 0 : index
    %59 = vector.load %arg8[%c0_48, %c0_49, %c0_50] : memref<4x1x128xf32, #tpu.memory_space<vmem>>, vector<1x1x128xf32>
    %60 = vector.shape_cast %59 : vector<1x1x128xf32> to vector<1x128xf32>
    %61 = vector.shape_cast %58 : vector<1x128xf32> to vector<1x1x128xf32>
    tpu.vector_store %arg8[%c0_48, %c0_49, %c0_50], %61 {strides = array<i32>} : memref<4x1x128xf32, #tpu.memory_space<vmem>>, vector<1x1x128xf32>,
    %c0_51 = arith.constant 0 : index
    %c1_52 = arith.constant 1 : index
    %c0_53 = arith.constant 0 : index
    %c0_54 = arith.constant 0 : index
    %62 = vector.load %arg3[%c0_51, %c1_52, %c0_53, %c0_54] : memref<1x4x2x128xf32, #tpu.memory_space<vmem>>, vector<1x1x2x128xf32>
    %63 = vector.shape_cast %62 : vector<1x1x2x128xf32> to vector<2x128xf32>
    %64 = arith.subf %63, %13 : vector<2x128xf32>
    %65 = math.exp %64 : vector<2x128xf32>
    %66 = arith.mulf %65, %34 : vector<2x128xf32>
    %c0_55 = arith.constant 0 : index
    %c1_56 = arith.constant 1 : index
    %c0_57 = arith.constant 0 : index
    %c0_58 = arith.constant 0 : index
    %67 = vector.load %arg4[%c0_55, %c1_56, %c0_57, %c0_58] : memref<1x4x2x128xf32, #tpu.memory_space<vmem>>, vector<1x1x2x128xf32>
    %68 = vector.shape_cast %67 : vector<1x1x2x128xf32> to vector<2x128xf32>
    %69 = arith.mulf %66, %68 : vector<2x128xf32>
    %70 = arith.mulf %66, %66 : vector<2x128xf32>
    %71 = arith.mulf %68, %68 : vector<2x128xf32>
    %72 = arith.addf %70, %71 : vector<2x128xf32>
    %c1_59 = arith.constant 1 : index
    %c0_60 = arith.constant 0 : index
    %c0_61 = arith.constant 0 : index
    %73 = vector.load %arg7[%c1_59, %c0_60, %c0_61] : memref<4x1x128xf32, #tpu.memory_space<vmem>>, vector<1x1x128xf32>
    %74 = vector.shape_cast %73 : vector<1x1x128xf32> to vector<1x128xf32>
    %cst_62 = arith.constant dense<0.000000e+00> : vector<128xf32>
    %75 = vector.multi_reduction <add>, %69, %cst_62 [0] : vector<2x128xf32> to vector<128xf32>
    %76 = vector.shape_cast %75 : vector<128xf32> to vector<1x128xf32>
    %77 = arith.addf %74, %76 : vector<1x128xf32>
    %c1_63 = arith.constant 1 : index
    %c0_64 = arith.constant 0 : index
    %c0_65 = arith.constant 0 : index
    %78 = vector.load %arg7[%c1_63, %c0_64, %c0_65] : memref<4x1x128xf32, #tpu.memory_space<vmem>>, vector<1x1x128xf32>
    %79 = vector.shape_cast %78 : vector<1x1x128xf32> to vector<1x128xf32>
    %80 = vector.shape_cast %77 : vector<1x128xf32> to vector<1x1x128xf32>
    tpu.vector_store %arg7[%c1_63, %c0_64, %c0_65], %80 {strides = array<i32>} : memref<4x1x128xf32, #tpu.memory_space<vmem>>, vector<1x1x128xf32>,
    %c1_66 = arith.constant 1 : index
    %c0_67 = arith.constant 0 : index
    %c0_68 = arith.constant 0 : index
    %81 = vector.load %arg8[%c1_66, %c0_67, %c0_68] : memref<4x1x128xf32, #tpu.memory_space<vmem>>, vector<1x1x128xf32>
    %82 = vector.shape_cast %81 : vector<1x1x128xf32> to vector<1x128xf32>
    %cst_69 = arith.constant dense<0.000000e+00> : vector<128xf32>
    %83 = vector.multi_reduction <add>, %72, %cst_69 [0] : vector<2x128xf32> to vector<128xf32>
    %84 = vector.shape_cast %83 : vector<128xf32> to vector<1x128xf32>
    %85 = arith.addf %82, %84 : vector<1x128xf32>
    %c1_70 = arith.constant 1 : index
    %c0_71 = arith.constant 0 : index
    %c0_72 = arith.constant 0 : index
    %86 = vector.load %arg8[%c1_70, %c0_71, %c0_72] : memref<4x1x128xf32, #tpu.memory_space<vmem>>, vector<1x1x128xf32>
    %87 = vector.shape_cast %86 : vector<1x1x128xf32> to vector<1x128xf32>
    %88 = vector.shape_cast %85 : vector<1x128xf32> to vector<1x1x128xf32>
    tpu.vector_store %arg8[%c1_70, %c0_71, %c0_72], %88 {strides = array<i32>} : memref<4x1x128xf32, #tpu.memory_space<vmem>>, vector<1x1x128xf32>,
    %c0_73 = arith.constant 0 : index
    %c2_74 = arith.constant 2 : index
    %c0_75 = arith.constant 0 : index
    %c0_76 = arith.constant 0 : index
    %89 = vector.load %arg3[%c0_73, %c2_74, %c0_75, %c0_76] : memref<1x4x2x128xf32, #tpu.memory_space<vmem>>, vector<1x1x2x128xf32>
    %90 = vector.shape_cast %89 : vector<1x1x2x128xf32> to vector<2x128xf32>
    %91 = arith.subf %90, %13 : vector<2x128xf32>
    %92 = math.exp %91 : vector<2x128xf32>
    %93 = arith.mulf %92, %34 : vector<2x128xf32>
    %c0_77 = arith.constant 0 : index
    %c2_78 = arith.constant 2 : index
    %c0_79 = arith.constant 0 : index
    %c0_80 = arith.constant 0 : index
    %94 = vector.load %arg4[%c0_77, %c2_78, %c0_79, %c0_80] : memref<1x4x2x128xf32, #tpu.memory_space<vmem>>, vector<1x1x2x128xf32>
    %95 = vector.shape_cast %94 : vector<1x1x2x128xf32> to vector<2x128xf32>
    %96 = arith.mulf %93, %95 : vector<2x128xf32>
    %97 = arith.mulf %93, %93 : vector<2x128xf32>
    %98 = arith.mulf %95, %95 : vector<2x128xf32>
    %99 = arith.addf %97, %98 : vector<2x128xf32>
    %c2_81 = arith.constant 2 : index
    %c0_82 = arith.constant 0 : index
    %c0_83 = arith.constant 0 : index
    %100 = vector.load %arg7[%c2_81, %c0_82, %c0_83] : memref<4x1x128xf32, #tpu.memory_space<vmem>>, vector<1x1x128xf32>
    %101 = vector.shape_cast %100 : vector<1x1x128xf32> to vector<1x128xf32>
    %cst_84 = arith.constant dense<0.000000e+00> : vector<128xf32>
    %102 = vector.multi_reduction <add>, %96, %cst_84 [0] : vector<2x128xf32> to vector<128xf32>
    %103 = vector.shape_cast %102 : vector<128xf32> to vector<1x128xf32>
    %104 = arith.addf %101, %103 : vector<1x128xf32>
    %c2_85 = arith.constant 2 : index
    %c0_86 = arith.constant 0 : index
    %c0_87 = arith.constant 0 : index
    %105 = vector.load %arg7[%c2_85, %c0_86, %c0_87] : memref<4x1x128xf32, #tpu.memory_space<vmem>>, vector<1x1x128xf32>
    %106 = vector.shape_cast %105 : vector<1x1x128xf32> to vector<1x128xf32>
    %107 = vector.shape_cast %104 : vector<1x128xf32> to vector<1x1x128xf32>
    tpu.vector_store %arg7[%c2_85, %c0_86, %c0_87], %107 {strides = array<i32>} : memref<4x1x128xf32, #tpu.memory_space<vmem>>, vector<1x1x128xf32>,
    %c2_88 = arith.constant 2 : index
    %c0_89 = arith.constant 0 : index
    %c0_90 = arith.constant 0 : index
    %108 = vector.load %arg8[%c2_88, %c0_89, %c0_90] : memref<4x1x128xf32, #tpu.memory_space<vmem>>, vector<1x1x128xf32>
    %109 = vector.shape_cast %108 : vector<1x1x128xf32> to vector<1x128xf32>
    %cst_91 = arith.constant dense<0.000000e+00> : vector<128xf32>
    %110 = vector.multi_reduction <add>, %99, %cst_91 [0] : vector<2x128xf32> to vector<128xf32>
    %111 = vector.shape_cast %110 : vector<128xf32> to vector<1x128xf32>
    %112 = arith.addf %109, %111 : vector<1x128xf32>
    %c2_92 = arith.constant 2 : index
    %c0_93 = arith.constant 0 : index
    %c0_94 = arith.constant 0 : index
    %113 = vector.load %arg8[%c2_92, %c0_93, %c0_94] : memref<4x1x128xf32, #tpu.memory_space<vmem>>, vector<1x1x128xf32>
    %114 = vector.shape_cast %113 : vector<1x1x128xf32> to vector<1x128xf32>
    %115 = vector.shape_cast %112 : vector<1x128xf32> to vector<1x1x128xf32>
    tpu.vector_store %arg8[%c2_92, %c0_93, %c0_94], %115 {strides = array<i32>} : memref<4x1x128xf32, #tpu.memory_space<vmem>>, vector<1x1x128xf32>,
    %c0_95 = arith.constant 0 : index
    %c3_96 = arith.constant 3 : index
    %c0_97 = arith.constant 0 : index
    %c0_98 = arith.constant 0 : index
    %116 = vector.load %arg3[%c0_95, %c3_96, %c0_97, %c0_98] : memref<1x4x2x128xf32, #tpu.memory_space<vmem>>, vector<1x1x2x128xf32>
    %117 = vector.shape_cast %116 : vector<1x1x2x128xf32> to vector<2x128xf32>
    %118 = arith.subf %117, %13 : vector<2x128xf32>
    %119 = math.exp %118 : vector<2x128xf32>
    %120 = arith.mulf %119, %34 : vector<2x128xf32>
    %c0_99 = arith.constant 0 : index
    %c3_100 = arith.constant 3 : index
    %c0_101 = arith.constant 0 : index
    %c0_102 = arith.constant 0 : index
    %121 = vector.load %arg4[%c0_99, %c3_100, %c0_101, %c0_102] : memref<1x4x2x128xf32, #tpu.memory_space<vmem>>, vector<1x1x2x128xf32>
    %122 = vector.shape_cast %121 : vector<1x1x2x128xf32> to vector<2x128xf32>
    %123 = arith.mulf %120, %122 : vector<2x128xf32>
    %124 = arith.mulf %120, %120 : vector<2x128xf32>
    %125 = arith.mulf %122, %122 : vector<2x128xf32>
    %126 = arith.addf %124, %125 : vector<2x128xf32>
    %c3_103 = arith.constant 3 : index
    %c0_104 = arith.constant 0 : index
    %c0_105 = arith.constant 0 : index
    %127 = vector.load %arg7[%c3_103, %c0_104, %c0_105] : memref<4x1x128xf32, #tpu.memory_space<vmem>>, vector<1x1x128xf32>
    %128 = vector.shape_cast %127 : vector<1x1x128xf32> to vector<1x128xf32>
    %cst_106 = arith.constant dense<0.000000e+00> : vector<128xf32>
    %129 = vector.multi_reduction <add>, %123, %cst_106 [0] : vector<2x128xf32> to vector<128xf32>
    %130 = vector.shape_cast %129 : vector<128xf32> to vector<1x128xf32>
    %131 = arith.addf %128, %130 : vector<1x128xf32>
    %c3_107 = arith.constant 3 : index
    %c0_108 = arith.constant 0 : index
    %c0_109 = arith.constant 0 : index
    %132 = vector.load %arg7[%c3_107, %c0_108, %c0_109] : memref<4x1x128xf32, #tpu.memory_space<vmem>>, vector<1x1x128xf32>
    %133 = vector.shape_cast %132 : vector<1x1x128xf32> to vector<1x128xf32>
    %134 = vector.shape_cast %131 : vector<1x128xf32> to vector<1x1x128xf32>
    tpu.vector_store %arg7[%c3_107, %c0_108, %c0_109], %134 {strides = array<i32>} : memref<4x1x128xf32, #tpu.memory_space<vmem>>, vector<1x1x128xf32>,
    %c3_110 = arith.constant 3 : index
    %c0_111 = arith.constant 0 : index
    %c0_112 = arith.constant 0 : index
    %135 = vector.load %arg8[%c3_110, %c0_111, %c0_112] : memref<4x1x128xf32, #tpu.memory_space<vmem>>, vector<1x1x128xf32>
    %136 = vector.shape_cast %135 : vector<1x1x128xf32> to vector<1x128xf32>
    %cst_113 = arith.constant dense<0.000000e+00> : vector<128xf32>
    %137 = vector.multi_reduction <add>, %126, %cst_113 [0] : vector<2x128xf32> to vector<128xf32>
    %138 = vector.shape_cast %137 : vector<128xf32> to vector<1x128xf32>
    %139 = arith.addf %136, %138 : vector<1x128xf32>
    %c3_114 = arith.constant 3 : index
    %c0_115 = arith.constant 0 : index
    %c0_116 = arith.constant 0 : index
    %140 = vector.load %arg8[%c3_114, %c0_115, %c0_116] : memref<4x1x128xf32, #tpu.memory_space<vmem>>, vector<1x1x128xf32>
    %141 = vector.shape_cast %140 : vector<1x1x128xf32> to vector<1x128xf32>
    %142 = vector.shape_cast %139 : vector<1x128xf32> to vector<1x1x128xf32>
    tpu.vector_store %arg8[%c3_114, %c0_115, %c0_116], %142 {strides = array<i32>} : memref<4x1x128xf32, #tpu.memory_space<vmem>>, vector<1x1x128xf32>,
    %c0_i32_117 = arith.constant 0 : i32
    %143 = arith.cmpi eq, %arg2, %c0_i32_117 : i32
    %144 = arith.extui %143 : i1 to i32
    %c0_i32_118 = arith.constant 0 : i32
    %145 = arith.cmpi ne, %144, %c0_i32_118 : i32
    scf.if %145 {
      %c0_119 = arith.constant 0 : index
      %c0_120 = arith.constant 0 : index
      %c0_121 = arith.constant 0 : index
      %146 = vector.load %arg7[%c0_119, %c0_120, %c0_121] : memref<4x1x128xf32, #tpu.memory_space<vmem>>, vector<4x1x128xf32>
      %cst_122 = arith.constant dense<0.000000e+00> : vector<4x128xf32>
      %147 = vector.multi_reduction <add>, %146, %cst_122 [1] : vector<4x1x128xf32> to vector<4x128xf32>
      %cst_123 = arith.constant dense<0.000000e+00> : vector<4xf32>
      %148 = vector.multi_reduction <add>, %147, %cst_123 [1] : vector<4x128xf32> to vector<4xf32>
      %149 = vector.shape_cast %148 : vector<4xf32> to vector<4x1xf32>
      %c0_124 = arith.constant 0 : index
      %c0_125 = arith.constant 0 : index
      %c0_126 = arith.constant 0 : index
      %c0_127 = arith.constant 0 : index
      %150 = vector.load %arg5[%c0_124, %c0_125, %c0_126, %c0_127] : memref<1x1x4x1xf32, #tpu.memory_space<vmem>>, vector<1x1x4x1xf32>
      %151 = vector.shape_cast %150 : vector<1x1x4x1xf32> to vector<4x1xf32>
      %152 = vector.shape_cast %149 : vector<4x1xf32> to vector<1x1x4x1xf32>
      tpu.vector_store %arg5[%c0_124, %c0_125, %c0_126, %c0_127], %152 {strides = array<i32>} : memref<1x1x4x1xf32, #tpu.memory_space<vmem>>, vector<1x1x4x1xf32>,
      %c0_128 = arith.constant 0 : index
      %c0_129 = arith.constant 0 : index
      %c0_130 = arith.constant 0 : index
      %153 = vector.load %arg8[%c0_128, %c0_129, %c0_130] : memref<4x1x128xf32, #tpu.memory_space<vmem>>, vector<4x1x128xf32>
      %cst_131 = arith.constant dense<0.000000e+00> : vector<4x128xf32>
      %154 = vector.multi_reduction <add>, %153, %cst_131 [1] : vector<4x1x128xf32> to vector<4x128xf32>
      %cst_132 = arith.constant dense<0.000000e+00> : vector<4xf32>
      %155 = vector.multi_reduction <add>, %154, %cst_132 [1] : vector<4x128xf32> to vector<4xf32>
      %156 = vector.shape_cast %155 : vector<4xf32> to vector<4x1xf32>
      %c0_133 = arith.constant 0 : index
      %c0_134 = arith.constant 0 : index
      %c0_135 = arith.constant 0 : index
      %c0_136 = arith.constant 0 : index
      %157 = vector.load %arg6[%c0_133, %c0_134, %c0_135, %c0_136] : memref<1x1x4x1xf32, #tpu.memory_space<vmem>>, vector<1x1x4x1xf32>
      %158 = vector.shape_cast %157 : vector<1x1x4x1xf32> to vector<4x1xf32>
      %159 = vector.shape_cast %156 : vector<4x1xf32> to vector<1x1x4x1xf32>
      tpu.vector_store %arg6[%c0_133, %c0_134, %c0_135, %c0_136], %159 {strides = array<i32>} : memref<1x1x4x1xf32, #tpu.memory_space<vmem>>, vector<1x1x4x1xf32>,
    } else {
    }
    return
  }
  func.func @transform_0(%arg0: i32, %arg1: i32, %arg2: i32) -> (i32, i32, i32, i32) {
    %c1_i32 = arith.constant 1 : i32
    %0 = arith.muli %arg1, %c1_i32 : i32
    %1 = arith.addi %0, %arg2 : i32
    %c0_i32 = arith.constant 0 : i32
    %c0_i32_0 = arith.constant 0 : i32
    %c0_i32_1 = arith.constant 0 : i32
    return %arg0, %c0_i32, %1, %c0_i32_0 : i32, i32, i32, i32
  }
  func.func @transform_1(%arg0: i32, %arg1: i32, %arg2: i32) -> (i32, i32, i32, i32) {
    %c1_i32 = arith.constant 1 : i32
    %0 = arith.muli %arg1, %c1_i32 : i32
    %1 = arith.addi %0, %arg2 : i32
    %c0_i32 = arith.constant 0 : i32
    %c0_i32_0 = arith.constant 0 : i32
    %c0_i32_1 = arith.constant 0 : i32
    return %arg0, %c0_i32, %1, %c0_i32_0 : i32, i32, i32, i32
  }
  func.func @transform_2(%arg0: i32, %arg1: i32, %arg2: i32) -> (i32, i32, i32, i32) {
    %c0_i32 = arith.constant 0 : i32
    %c0_i32_0 = arith.constant 0 : i32
    %c0_i32_1 = arith.constant 0 : i32
    return %arg0, %arg1, %c0_i32, %c0_i32_0 : i32, i32, i32, i32
  }
  func.func @transform_3(%arg0: i32, %arg1: i32, %arg2: i32) -> (i32, i32, i32, i32) {
    %c0_i32 = arith.constant 0 : i32
    %c0_i32_0 = arith.constant 0 : i32
    %c0_i32_1 = arith.constant 0 : i32
    return %arg0, %arg1, %c0_i32, %c0_i32_0 : i32, i32, i32, i32
  }
}

</mosaic_0001>

<bundles_post_ra>
// kernel: tpu_custom_call.1
= control target key start
LH: loop header
LB: loop body
LE: loop exit
PB: predicated region body
PF: predicated region fallthrough
CT: control target
= control target key end

     0   :  { %9 = vsyncpa [#allocation5], 0  ;;  %s1161_s0 = inlined_call_operand.hbm [shape: f32[2,4,2,128], index: 0, kind: input, shape index: {}]   ;;  %s1162_s1 = inlined_call_operand.hbm [shape: f32[2,4,2,128], index: 1, kind: input, shape index: {}]   ;;  %s1163_s2 = inlined_call_operand.vmem [shape: f32[2,1,4,1], index: 2, kind: output, shape index: {0}]   ;;  %s1164_s3 = inlined_call_operand.vmem [shape: f32[2,1,4,1], index: 3, kind: output, shape index: {1}]  }
   0x1   :  { %11 = vsyncpa [#allocation5 + $0x1], 0 }
   0x2   :  { %12 = vsyncpa [#allocation7], 0 }
   0x3   :  { %14 = vsyncpa [#allocation7 + $0x1], 0  ;;  %s947_s12 = smov 0   ;;  %s949_s13 = smov 0  }
   0x4   :  { %s951_s14 = smov 0   ;;  %s953_s15 = smov 0  }
   0x5   :  { %s955_s16 = smov 0   ;;  %s957_s17 = smov 0  }
   0x6 LB: > { %s697_s18 = sadd.s32 4294967295, %s919_s17   ;;  %s39_s19 = sadd.s32 1, %s915_s16  ;;  %s919_s17 = sphi %s957_s17, %s20_s17   ;;  %s915_s16 = sphi %s955_s16, %s1175_s16   ;;  %s911_s15 = sphi %s953_s15, %s1174_s15   ;;  %s907_s14 = sphi %s951_s14, %s1173_s14   ;;  %s903_s13 = sphi %s949_s13, %s1172_s13   ;;  %s899_s12 = sphi %s947_s12, %s1171_s12  }
   0x7   : > { %p41_p0 = scmp.ge.s32.totalorder %s39_s19, 2  ;;  %s50_s20 = sadd.s32 1, %s907_s14 }
   0x8   : > { %p57_p1 = scmp.ne.s32.totalorder %s907_s14, %s903_s13  ;;  %p58_p2 = scmp.eq.s32.totalorder %s919_s17, 0 }
   0x9   : > { %s1177_s19 = smov (%p41_p0, %s39_s19), 0  ;;  %p63_p4 = scmp.ne.s32.totalorder %s903_s13, %s899_s12 }
   0xa   : > { %p983_p3 = por %p58_p2, %p57_p1  ;;  %s45_s22 = ssub.s32 %s915_s16, %s1177_s19 }
   0xb   : > { %p64_p5 = scmp.eq.s32.totalorder %s697_s18, 0  ;;  %p48_p6 = scmp.eq.s32.totalorder %s45_s22, 0 }
   0xc   : > { %p736_p8 = scmp.lt.s32.totalorder %s919_s17, 2  ;;  %s999_s25 = sand.u32 1, %s907_s14  }
   0xd   : > { %p990_p7 = por %p64_p5, %p63_p4  ;;  %s723_s26 = sshll.u32 %s915_s16, 7 }
   0xe   : > { %s996_s24 = scalar_select %p48_p6, %s907_s14, %s50_s20  }
   0xf   : > { %s1167_s23 = scalar_select %p990_p7, 1, 0 }
  0x10   : > { %s701_s27 = sshll.u32 %s999_s25, 3  ;;  %s1008_s30 = scalar_lea.hbm %s1161_s0, %s723_s26 }
  0x11   : > { %s177_s4 = scalar_lea.vmem [#allocation4], %s701_s27  ;;  %p1014_p9 = pnand %p736_p8, %p983_p3 }
  0x12   : > { %s186_s5 = sshll.u32 %s177_s4, 4  ;;  %s174_s7 = scalar_lea.sflag [#allocation5], %s999_s25  ;;  %s1018_s5 = int_to_ptr.vmem [resolvable:$true] %s186_s5 }
  0x13   : > { %s805_s8 = scalar_lea.hbm %s1008_s30, 128  ;;  %p807_p11 = pneg %p1014_p9 }
  0x14   : > { %p806_p10 = scmp.ne.s32.totalorder %s1008_s30, %s805_s8  ;;  %s810_s11 = scalar_lea.hbm %s1161_s0, 256 }
  0x15   : > { %p811_p0 = scmp.lt.u32.totalorder %s1008_s30, %s1161_s0  ;;  %p812_p1 = scmp.lt.u32.totalorder %s810_s11, %s805_s8 }
  0x16   : > { %p808_p12 = pnand %p807_p11, %p806_p10  ;;  %p814_p3 = scmp.lt.u32.totalorder %s805_s8, %s1008_s30 }
  0x17   : > { %p813_p2 = por %p812_p1, %p811_p0 }
  0x18   : > { %p809_p13 = pneg %p808_p12 }
  0x19   : > { %p815_p4 = por %p814_p3, %p813_p2 }
  0x1b   : > { %p816_p5 = pnand %p815_p4, %p809_p13 }
  0x1d   : > { %819 = shalt.err (!%p816_p5)
}
  0x1e   : > { %s820_s20 = scalar_lea.vmem %s1018_s5, 128  ;;  %s921_s21 = smov [#allocation4]  }
  0x1f   : > { %p821_p6 = scmp.ne.s32.totalorder %s1018_s5, %s820_s20  ;;  %s825_s22 = sshll.u32 %s921_s21, 4  ;;  %s826_s22 = int_to_ptr.vmem [resolvable:$false] %s825_s22 }
  0x20   : > { %s827_s28 = scalar_lea.vmem %s826_s22, 256  ;;  %p828_p12 = scmp.lt.s32.totalorder %s1018_s5, %s826_s22 }
  0x21   : > { %p823_p8 = pnand %p821_p6, %p807_p11  ;;  %p829_p0 = scmp.lt.s32.totalorder %s827_s28, %s820_s20 }
  0x23   : > { %p824_p10 = pneg %p823_p8  ;;  %p830_p1 = por %p829_p0, %p828_p12 }
  0x25   : > { %p831_p2 = pnand %p830_p1, %p824_p10 }
  0x27   : > { %834 = shalt.err (!%p831_p2)
}
  0x28   : > { %s922_s29 = smov 32   ;;  %s923_s4 = smov 2  }
  0x29   : > { %732 = dma.hbm_to_vmem [thread:$0]  (!%p1014_p9), %s1008_s30, 128, %s1018_s5, %s174_s7, %s922_s29, %s922_s29, %s923_s4  }
  0x2a   : > { %p707_p13 = scmp.ge.s32.totalorder %s919_s17, 1  ;;  %p217_p3 = scmp.lt.s32.totalorder %s919_s17, 3 }
  0x2b   : > { %s1062_s11 = scalar_lea.hbm %s1162_s1, %s723_s26  ;;  %s200_s12 = scalar_lea.vmem [#allocation6], %s701_s27 }
  0x2c   : > { %p1053_p4 = pnand %p707_p13, %p217_p3  ;;  %s209_s18 = sshll.u32 %s200_s12, 4  ;;  %s1066_s18 = int_to_ptr.vmem [resolvable:$true] %s209_s18 }
  0x2d   : > { %s197_s30 = scalar_lea.sflag [#allocation7], %s999_s25  ;;  %s835_s5 = scalar_lea.hbm %s1062_s11, 128 }
  0x2e   : > { %p836_p5 = scmp.ne.s32.totalorder %s1062_s11, %s835_s5  ;;  %s840_s26 = scalar_lea.hbm %s1162_s1, 256 }
  0x2f   : > { %p841_p10 = scmp.lt.u32.totalorder %s1062_s11, %s1162_s1  ;;  %p842_p12 = scmp.lt.u32.totalorder %s840_s26, %s835_s5 }
  0x30   : > { %p838_p6 = pnand %p836_p5, %p807_p11  ;;  %p844_p1 = scmp.lt.u32.totalorder %s835_s5, %s1062_s11 }
  0x31   : > { %p843_p0 = por %p842_p12, %p841_p10 }
  0x32   : > { %p839_p8 = pneg %p838_p6 }
  0x33   : > { %p845_p2 = por %p844_p1, %p843_p0 }
  0x35   : > { %p846_p13 = pnand %p845_p2, %p839_p8 }
  0x37   : > { %849 = shalt.err (!%p846_p13)
}
  0x38   : > { %s850_s27 = scalar_lea.vmem %s1066_s18, 128  ;;  %s924_s28 = smov [#allocation6]  }
  0x39   : > { %p851_p3 = scmp.ne.s32.totalorder %s1066_s18, %s850_s27  ;;  %s855_s9 = sshll.u32 %s924_s28, 4  ;;  %s856_s9 = int_to_ptr.vmem [resolvable:$false] %s855_s9 }
  0x3a   : > { %s857_s10 = scalar_lea.vmem %s856_s9, 256  ;;  %p858_p7 = scmp.lt.s32.totalorder %s1066_s18, %s856_s9 }
  0x3b   : > { %p853_p5 = pnand %p851_p3, %p807_p11  ;;  %p859_p10 = scmp.lt.s32.totalorder %s857_s10, %s850_s27 }
  0x3d   : > { %p854_p6 = pneg %p853_p5  ;;  %p860_p12 = por %p859_p10, %p858_p7 }
  0x3f   : > { %p861_p0 = pnand %p860_p12, %p854_p6 }
  0x41   : > { %864 = shalt.err (!%p861_p0)
}
  0x42   : > { %735 = dma.hbm_to_vmem [thread:$0]  (!%p1014_p9), %s1062_s11, 128, %s1066_s18, %s197_s30, %s922_s29, %s922_s29, %s923_s4  }
  0x43   : > { %221 = sbr.rel (%p1053_p4) target bundleno = 302 (0x12e), region = 28  ;;  %s223_s12 = sand.u32 (!%p1053_p4), 1, %s903_s13  }
  0x44   : > { %s708_s5 = sshll.u32 (!%p1053_p4), %s223_s12, 3  ;;  %s224_s7 = scalar_lea.sflag (!%p1053_p4), [#allocation5], %s223_s12 }
  0x45   : > { %s1100_s20 = scalar_lea.vmem (!%p1053_p4), [#allocation4], %s708_s5  ;;  %p1170_p7 = scmp.ne.s32.totalorder (!%p1053_p4), %s1167_s23, 0 }
  0x4a   : > { %890 = dma.done.wait (%p1170_p7), %s224_s7, 128  }
  0x4b   : > { %892 = vsyncadd (%p1170_p7), %s224_s7, 4294967168  ;;  %s233_s25 = scalar_lea.sflag [#allocation7], %s223_s12  ;;  %s1106_s6 = scalar_lea.vmem [#allocation6], %s708_s5 }
  0x4c   : > { %894 = dma.done.wait (%p1170_p7), %s233_s25, 128  }
  0x4d   : > { %896 = vsyncadd (%p1170_p7), %s233_s25, 4294967168  ;;  %v925_v0 = vmov 0.0   ;;  %v301_v1 = vld [vmem:[%s1100_s20] sm:$0x3]  ;;  %v712_v2 = vld [vmem:[%s1100_s20 + $0x2] sm:$0x3]  ;;  %v474_v42 = vlaneseq }
  0x4e   : > { %293 = vst [vmem:[#allocation2] sm:$0x1] %v925_v0  ;;  %294 = vst [vmem:[#allocation2 + $0x1] sm:$0x1] %v925_v0  ;;  %v713_v3 = vld [vmem:[%s1100_s20 + $0x4] sm:$0x3]  ;;  %v304_v4 = vmax.f32 %v301_v1, %v712_v2 }
  0x4f   : > { %295 = vst [vmem:[#allocation2 + $0x2] sm:$0x1] %v925_v0  ;;  %296 = vst [vmem:[#allocation2 + $0x3] sm:$0x1] %v925_v0  ;;  %v714_v5 = vld [vmem:[%s1100_s20 + $0x6] sm:$0x3] }
  0x50   : > { %297 = vst [vmem:[#allocation3] sm:$0x1] %v925_v0  ;;  %298 = vst [vmem:[#allocation3 + $0x1] sm:$0x1] %v925_v0  ;;  %v307_v6 = vmax.f32 %v304_v4, %v713_v3  ;;  %v715_v16 = vld [vmem:[%s1100_s20 + $0x2] sm:$0x3] }
  0x51   : > { %299 = vst [vmem:[#allocation3 + $0x2] sm:$0x1] %v925_v0  ;;  %300 = vst [vmem:[#allocation3 + $0x3] sm:$0x1] %v925_v0  ;;  %v717_v17 = vld [vmem:[%s1100_s20 + $0x4] sm:$0x3] }
  0x52   : > { %v310_v7 = vmax.f32 %v307_v6, %v714_v5  ;;  %v719_v18 = vld [vmem:[%s1100_s20 + $0x6] sm:$0x3]  ;;  %v329_v35 = vld [vmem:[%s1106_s6] sm:$0x3]  ;;  %vm335_vm0 = vcmask 1041408   ;;  %vm494_vm1 = vcmask 1043456  }
  0x53   : > { %v716_v37 = vld [vmem:[%s1106_s6 + $0x2] sm:$0x3]  ;;  %v718_v38 = vld [vmem:[%s1106_s6 + $0x4] sm:$0x3]  ;;  %v720_v39 = vld [vmem:[%s1106_s6 + $0x6] sm:$0x3]  ;;  %v332_v47 = vmul.f32 %v329_v35, %v329_v35 }
  0x54   : > { %v311_v8 = vsub.f32 %v301_v1, %v310_v7  ;;  %v314_v9 = vsub.f32 %v712_v2, %v310_v7  ;;  %v318_v10 = vsub.f32 %v713_v3, %v310_v7  ;;  %v322_v11 = vsub.f32 %v714_v5, %v310_v7  ;;  %p275_p9 = scmp.lt.s32.totalorder %s911_s15, 1 }
  0x55   : > { %v356_v19 = vsub.f32 %v715_v16, %v310_v7  ;;  %v389_v20 = vsub.f32 %v717_v17, %v310_v7  ;;  %v422_v21 = vsub.f32 %v719_v18, %v310_v7  ;;  %v926_v40 = vmov 1966171168  }
  0x56   : > { %v312_v12 = vmul.f32 1.442695, %v311_v8  ;;  %v315_v13 = vmul.f32 1.442695, %v314_v9  ;;  %v319_v14 = vmul.f32 1.442695, %v318_v10  ;;  %v1123_v41 = vunpack.c.l.s4 %v926_v40 }
  0x57   : > { %v323_v15 = vmul.f32 1.442695, %v322_v11  ;;  %v357_v23 = vmul.f32 1.442695, %v356_v19  ;;  %v390_v25 = vmul.f32 1.442695, %v389_v20  ;;  %v364_v48 = vmul.f32 %v716_v37, %v716_v37 }
  0x58   : > { %789 = vpow2.f32 %v312_v12  ;;  %v423_v28 = vmul.f32 1.442695, %v422_v21  ;;  %v397_v49 = vmul.f32 %v718_v38, %v718_v38  ;;  %v430_v50 = vmul.f32 %v720_v39, %v720_v39  ;;  %s1179_s15 = smov (!%p275_p9, %s911_s15), 1 }
  0x59   : > { %791 = vpow2.f32 %v315_v13  ;;  %s710_s23 = sshll.u32 %s1179_s15, 2  ;;  %vm498_vm2 = vcmask 3072  }
  0x5a   : > { %793 = vpow2.f32 %v319_v14  ;;  %s281_s8 = scalar_lea.vmem %s1163_s2, %s710_s23  ;;  %s288_s30 = scalar_lea.vmem %s1164_s3, %s710_s23 }
  0x5b   : > { %795 = vpow2.f32 %v323_v15 }
  0x5c   : > { %797 = vpow2.f32 %v357_v23 }
  0x5d   : > { %799 = vpow2.f32 %v390_v25 }
  0x5e   : > { %801 = vpow2.f32 %v423_v28  ;;  %v367_v28 = vld [vmem:[#allocation2 + $0x1] sm:$0x1] }
  0x62   : > { %v790_v22 = vpop.eup %789 }
  0x63   : > { %v792_v24 = vpop.eup %791 }
  0x64   : > { %v794_v26 = vpop.eup %793  ;;  %v317_v27 = vadd.f32 %v792_v24, %v790_v22 }
  0x65   : > { %v796_v29 = vpop.eup %795 }
  0x66   : > { %v321_v30 = vadd.f32 %v794_v26, %v317_v27  ;;  %v798_v32 = vpop.eup %797  ;;  %v334_v27 = vld [vmem:[#allocation2] sm:$0x1] }
  0x67   : > { %v800_v33 = vpop.eup %799 }
  0x68   : > { %v325_v31 = vadd.f32 %v796_v29, %v321_v30  ;;  %v802_v34 = vpop.eup %801 }
  0x6a   : > { %803 = vrcp.f32 %v325_v31 }
  0x74   : > { %v804_v36 = vpop.eup %803 }
  0x75   : > { %v328_v43 = vmul.f32 %v804_v36, %v790_v22  ;;  %v359_v44 = vmul.f32 %v804_v36, %v798_v32  ;;  %v392_v45 = vmul.f32 %v804_v36, %v800_v33  ;;  %v425_v46 = vmul.f32 %v804_v36, %v802_v34 }
  0x77   : > { %v330_v51 = vmul.f32 %v329_v35, %v328_v43  ;;  %v362_v52 = vmul.f32 %v716_v37, %v359_v44  ;;  %v395_v53 = vmul.f32 %v718_v38, %v392_v45  ;;  %v428_v54 = vmul.f32 %v720_v39, %v425_v46  ;;  %v400_v35 = vld [vmem:[#allocation2 + $0x2] sm:$0x1]  ;;  %v433_v38 = vld [vmem:[#allocation2 + $0x3] sm:$0x1] }
  0x78   : > { %v331_v55 = vmul.f32 %v328_v43, %v328_v43  ;;  %v363_v56 = vmul.f32 %v359_v44, %v359_v44  ;;  %v396_v57 = vmul.f32 %v392_v45, %v392_v45  ;;  %v429_v58 = vmul.f32 %v425_v46, %v425_v46 }
  0x79   : > { %v336_v59 = vsel %vm335_vm0, %v330_v51, 0.0  ;;  %v368_v60 = vsel %vm335_vm0, %v362_v52, 0.0  ;;  %v401_v61 = vsel %vm335_vm0, %v395_v53, 0.0  ;;  %v434_v62 = vsel %vm335_vm0, %v428_v54, 0.0 }
  0x7a   : > { %v337_v63 = vrot.slane %v336_v59, 4  ;;  %v369_v0 = vrot.slane %v368_v60, 4  ;;  %v402_v1 = vrot.slane %v401_v61, 4  ;;  %v435_v2 = vrot.slane %v434_v62, 4 }
  0x7b   : > { %v333_v3 = vadd.f32 %v332_v47, %v331_v55  ;;  %v365_v4 = vadd.f32 %v364_v48, %v363_v56  ;;  %v398_v5 = vadd.f32 %v397_v49, %v396_v57  ;;  %v431_v6 = vadd.f32 %v430_v50, %v429_v58  ;;  %v345_v57 = vld [vmem:[#allocation3] sm:$0x1] }
  0x7c   : > { %v338_v7 = vadd.f32 %v337_v63, %v336_v59  ;;  %v370_v8 = vadd.f32 %v369_v0, %v368_v60  ;;  %v403_v9 = vadd.f32 %v402_v1, %v401_v61  ;;  %v436_v10 = vadd.f32 %v435_v2, %v434_v62  ;;  %v378_v62 = vld [vmem:[#allocation3 + $0x1] sm:$0x1]  ;;  %v411_v63 = vld [vmem:[#allocation3 + $0x2] sm:$0x1]  ;;  %v444_v0 = vld [vmem:[#allocation3 + $0x3] sm:$0x1] }
  0x7d   : > { %v346_v11 = vsel %vm335_vm0, %v333_v3, 0.0  ;;  %v379_v12 = vsel %vm335_vm0, %v365_v4, 0.0  ;;  %v412_v13 = vsel %vm335_vm0, %v398_v5, 0.0  ;;  %v445_v14 = vsel %vm335_vm0, %v431_v6, 0.0 }
  0x7e   : > { %v339_v15 = vrot.slane %v338_v7, 2  ;;  %v371_v16 = vrot.slane %v370_v8, 2  ;;  %v404_v17 = vrot.slane %v403_v9, 2  ;;  %v437_v18 = vrot.slane %v436_v10, 2 }
  0x7f   : > { %v347_v19 = vrot.slane %v346_v11, 4  ;;  %v380_v20 = vrot.slane %v379_v12, 4  ;;  %v413_v21 = vrot.slane %v412_v13, 4  ;;  %v446_v22 = vrot.slane %v445_v14, 4 }
  0x80   : > { %v340_v23 = vadd.f32 %v339_v15, %v338_v7  ;;  %v372_v24 = vadd.f32 %v371_v16, %v370_v8  ;;  %v405_v25 = vadd.f32 %v404_v17, %v403_v9  ;;  %v438_v26 = vadd.f32 %v437_v18, %v436_v10 }
  0x81   : > { %v348_v29 = vadd.f32 %v347_v19, %v346_v11  ;;  %v381_v30 = vadd.f32 %v380_v20, %v379_v12  ;;  %v414_v31 = vadd.f32 %v413_v21, %v412_v13  ;;  %v447_v32 = vadd.f32 %v446_v22, %v445_v14 }
  0x82   : > { %v341_v33 = vrot.slane %v340_v23, 1  ;;  %v373_v34 = vrot.slane %v372_v24, 1  ;;  %v406_v36 = vrot.slane %v405_v25, 1  ;;  %v439_v37 = vrot.slane %v438_v26, 1 }
  0x83   : > { %v349_v39 = vrot.slane %v348_v29, 2  ;;  %v382_v40 = vrot.slane %v381_v30, 2  ;;  %v415_v43 = vrot.slane %v414_v31, 2  ;;  %v448_v44 = vrot.slane %v447_v32, 2 }
  0x84   : > { %v342_v45 = vadd.f32 %v341_v33, %v340_v23  ;;  %v374_v46 = vadd.f32 %v373_v34, %v372_v24  ;;  %v407_v47 = vadd.f32 %v406_v36, %v405_v25  ;;  %v440_v48 = vadd.f32 %v439_v37, %v438_v26 }
  0x85   : > { %v350_v49 = vadd.f32 %v349_v39, %v348_v29  ;;  %v383_v50 = vadd.f32 %v382_v40, %v381_v30  ;;  %v416_v51 = vadd.f32 %v415_v43, %v414_v31  ;;  %v449_v52 = vadd.f32 %v448_v44, %v447_v32 }
  0x86   : > { %v343_v53 = vadd.f32 %v342_v45, %v334_v27  ;;  %v375_v54 = vadd.f32 %v374_v46, %v367_v28  ;;  %v408_v55 = vadd.f32 %v407_v47, %v400_v35  ;;  %v441_v56 = vadd.f32 %v440_v48, %v433_v38 }
  0x87   : > { %v351_v58 = vrot.slane %v350_v49, 1  ;;  %v384_v59 = vrot.slane %v383_v50, 1  ;;  %v417_v60 = vrot.slane %v416_v51, 1  ;;  %v450_v61 = vrot.slane %v449_v52, 1 }
  0x88   : > { %344 = vst [vmem:[#allocation2] sm:$0x1] %v343_v53  ;;  %376 = vst [vmem:[#allocation2 + $0x1] sm:$0x1] %v375_v54  ;;  %v473_v5 = vunpack.c.0.s8 %v1123_v41  ;;  %v475_v6 = vshrl.u32 %v474_v42, 7 }
  0x89   : > { %409 = vst [vmem:[#allocation2 + $0x2] sm:$0x1] %v408_v55  ;;  %442 = vst [vmem:[#allocation2 + $0x3] sm:$0x1] %v441_v56  ;;  %v352_v1 = vadd.f32 %v351_v58, %v350_v49  ;;  %v385_v2 = vadd.f32 %v384_v59, %v383_v50  ;;  %v418_v3 = vadd.f32 %v417_v60, %v416_v51 }
  0x8a   : > { %v451_v4 = vadd.f32 %v450_v61, %v449_v52  ;;  %v476_v11 = vsub.s32 %v473_v5, %v475_v6 }
  0x8b   : > { %v353_v7 = vadd.f32 %v352_v1, %v345_v57  ;;  %v386_v8 = vadd.f32 %v385_v2, %v378_v62  ;;  %v419_v9 = vadd.f32 %v418_v3, %v411_v63 }
  0x8c   : > { %v452_v10 = vadd.f32 %v451_v4, %v444_v0 }
  0x8d   : > { %354 = vst [vmem:[#allocation3] sm:$0x1] %v353_v7  ;;  %387 = vst [vmem:[#allocation3 + $0x1] sm:$0x1] %v386_v8 }
  0x8e   : > { %420 = vst [vmem:[#allocation3 + $0x2] sm:$0x1] %v419_v9  ;;  %453 = vst [vmem:[#allocation3 + $0x3] sm:$0x1] %v452_v10 }
  0x8f   : > { %v457_v12 = vld [vmem:[#allocation2] sm:$0x1]  ;;  %v458_v13 = vld [vmem:[#allocation2 + $0x1] sm:$0x1] }
  0x90   : > { %v459_v14 = vld [vmem:[#allocation2 + $0x2] sm:$0x1]  ;;  %v460_v15 = vld [vmem:[#allocation2 + $0x3] sm:$0x1]  ;;  %v469_v16 = vcombine.low %v457_v12, %v458_v13 }
  0x91   : > { %v470_v17 = vcombine.low %v459_v14, %v460_v15 }
  0x92   : > { %v477_v18 = vrot.slane %v469_v16, %v476_v11 }
  0x93   : > { %v484_v19 = vrot.slane %v470_v17, %v476_v11 }
  0x94   : > { %v500_v41 = vld [vmem:[#allocation3] sm:$0x1]  ;;  %v501_v20 = vld [vmem:[#allocation3 + $0x1] sm:$0x1] }
  0x95   : > { %v502_v42 = vld [vmem:[#allocation3 + $0x2] sm:$0x1]  ;;  %v485_v21 = vcombine.low %v477_v18, %v484_v19  ;;  %v503_v22 = vld [vmem:[#allocation3 + $0x3] sm:$0x1]  ;;  %v512_v23 = vcombine.low %v500_v41, %v501_v20 }
  0x96   : > { %v513_v24 = vcombine.low %v502_v42, %v503_v22 }
  0x97   : > { %v492_v25 = vrot.slane %v485_v21, %v476_v11  ;;  %v520_v26 = vrot.slane %v512_v23, %v476_v11 }
  0x98   : > { %v527_v27 = vrot.slane %v513_v24, %v476_v11 }
  0x99   : > { %v495_v28 = vsel %vm494_vm1, %v492_v25, 0.0 }
  0x9a   : > { %496 = vadd.xlane.f32.xlu0 %v495_v28  ;;  %v528_v29 = vcombine.low %v520_v26, %v527_v27 }
  0x9c   : > { %v535_v30 = vrot.slane %v528_v29, %v476_v11 }
  0x9e   : > { %v537_v31 = vsel %vm494_vm1, %v535_v30, 0.0 }
  0x9f   : > { %538 = vadd.xlane.f32.xlu0 %v537_v31 }
 0x127   : > { %v497_v32 = vpop.xlane.xlu0 %496 }
 0x128   : > { %499 = vst.msk [vmem:[%s281_s8] sm:$0xf] %vm498_vm2, %v497_v32 }
 0x12c   : > { %v539_v33 = vpop.xlane.xlu0 %538 }
 0x12d   : > { %540 = vst.msk [vmem:[%s288_s30] sm:$0xf] %vm498_vm2, %v539_v33 }
 0x12e PF: > { %s20_s17 = sadd.s32 1, %s919_s17   ;;  %s1171_s12 = smov %s903_s13 }
 0x12f   : > { %p17_p11 = scmp.ge.s32.totalorder %s20_s17, 4   ;;  %s1172_s13 = smov %s907_s14 }
 0x130   : > { %s1173_s14 = smov %s996_s24  ;;  %s1174_s15 = smov %s915_s16 }
 0x131   : > { %s1175_s16 = smov %s1177_s19  ;;  %19 = sbr.rel (!%p17_p11) target bundleno = 6 (0x6), region = 113 }
 0x138   :  { %586 = vsyncpa [#allocation5], 1 }
 0x139   :  { %588 = vsyncpa [#allocation5 + $0x1], 1 }
 0x13a   :  { %589 = vsyncpa [#allocation7], 1 }
 0x13b   :  { %591 = vsyncpa [#allocation7 + $0x1], 1 }

</bundles_post_ra>
